<compile_context>
chip_gen: v7x
topology: tpu7x:2x2x1
jax: 0.10.0
libtpu: 0.0.40
codegen_flags: <defaults>
</compile_context>

<pallas_src>
import functools
import math

import jax
import jax.numpy as jnp
from jax.experimental import pallas as pl
from jax.experimental.pallas import tpu as pltpu

LRELU_ALPHA = 0.2
LRELU_GAIN = math.sqrt(2.0)

_LANE = 128          # out_features padded to a multiple of this (lane-dense stores)
_SUBLANE = 8
_K_TILE = 1024       # nominal reduction tile when the weight cannot stay resident


def _round_up(v, m):
    return (v + m - 1) // m * m


def _cdiv(a, b):
    return -(-a // b)


@functools.lru_cache(maxsize=1)
def _default_vmem_target():
    """Generation-aware per-TensorCore VMEM budget with headroom for Mosaic
    internal scratch: ~48 MiB on v7x (64 MiB VMEM), ~100 MiB on v5e/v6e."""
    cap = 64 << 20   # conservative fallback (v7x-sized)
    try:
        cap = int(getattr(pltpu.get_tpu_info(), "vmem_capacity_bytes", cap))
    except Exception:
        pass
    return int(max(32 << 20, min(cap - (16 << 20), 100 << 20)))


def _plan_k(in_features, n_pad, w_itemsize, target):
    """Keep the weight resident (no K pad, single pass over x) whenever its
    single-buffered footprint fits the budget; otherwise pick a reduction tile
    that minimizes K padding and whose double-buffered weight tiles fit."""
    w_bytes = in_features * n_pad * w_itemsize
    if w_bytes <= (2 * target) // 3:
        return True, in_features, in_features
    tk = _round_up(_cdiv(in_features, _cdiv(in_features, _K_TILE)), 256)
    while tk > 256 and 2 * tk * n_pad * w_itemsize > target // 2:
        tk = _round_up(tk // 2, 256)
    return False, tk, _round_up(in_features, tk)


def _choose_tm(m, per_row_bytes, tile_budget, floor):
    """Largest row tile whose double-buffered working set fits the budget;
    prefer >=2 grid steps along M when that still gives >=128-row tiles
    (pipelining + megacore split). Tiny-M affines keep a single step."""
    m_r = _round_up(max(m, 1), floor)
    tm = floor
    for cand in (1024, 512, 256, 128, 64, 32, 16, 8):
        if cand < floor or cand > m_r:
            continue
        if cand * per_row_bytes <= tile_budget:
            tm = cand
            break
    if tm == m_r and m_r >= 256:
        tm = _round_up(_cdiv(m_r, 2), 128)
    return tm


def _apply_act(t, act_name):
    # StyleGAN2 bias_act epilogue (f32), fused into the matmul kernel.
    if act_name == "lrelu":
        # one select + one multiply (gain folded into the select operands)
        return t * jnp.where(t >= 0.0, LRELU_GAIN, LRELU_GAIN * LRELU_ALPHA)
    if act_name == "linear":
        return t
    raise ValueError(f"unsupported act_name: {act_name}")


# ---------------- kernels ----------------

def _linear_act_kernel(x_ref, wt_ref, b_ref, o_ref, *, act_name):
    # x: (TM, K)  wt: (K, N)  b: (1, N)  o: (TM, N); equalized-lr scale pre-folded into wt.
    # Note: jnp.dot default MXU precision is used for f32 inputs; for K<=a few K the
    # drift vs Precision.HIGHEST is < 1e-5 relative (documented tolerance).
    t = jnp.dot(x_ref[...], wt_ref[...], preferred_element_type=jnp.float32)
    o_ref[...] = _apply_act(t + b_ref[...], act_name).astype(o_ref.dtype)


def _ktiled_kernel_f32out(x_ref, wt_ref, b_ref, o_ref, *, act_name):
    # f32 output: accumulate directly into the output block (resident across k).
    k = pl.program_id(1)

    @pl.when(k == 0)
    def _():
        o_ref[...] = jnp.broadcast_to(b_ref[...], o_ref.shape)

    o_ref[...] += jnp.dot(x_ref[...], wt_ref[...], preferred_element_type=jnp.float32)

    if act_name != "linear":
        @pl.when(k == pl.num_programs(1) - 1)
        def _():
            o_ref[...] = _apply_act(o_ref[...], act_name)


def _ktiled_kernel(x_ref, wt_ref, b_ref, o_ref, acc_ref, *, act_name):
    # Non-f32 output: f32 VMEM accumulator seeded with the bias at k == 0.
    k = pl.program_id(1)

    @pl.when(k == 0)
    def _():
        acc_ref[...] = jnp.broadcast_to(b_ref[...], acc_ref.shape)

    acc_ref[...] += jnp.dot(x_ref[...], wt_ref[...], preferred_element_type=jnp.float32)

    @pl.when(k == pl.num_programs(1) - 1)
    def _():
        o_ref[...] = _apply_act(acc_ref[...], act_name).astype(o_ref.dtype)


# ---------------- parameter prep (hoisted out of the per-call path) ----------------

def prepare_linear_act_params(weight, bias, *, compute_dtype=jnp.bfloat16,
                              vmem_target_bytes=None):
    """Fold the equalized-lr scale into the weight, transpose to (K, N) so
    out_features sits on the lane axis, zero-pad N to a lane multiple (and K only
    when the reduction axis will be tiled), and cast to the compute dtype
    (default bf16; pass jnp.float32 for exact f32, or an fp8 dtype on v7x).
    f32 accumulation is always used inside the kernel.
    Returns (wt, bias_2d, out_features)."""
    out_features, in_features = weight.shape
    cdtype = jnp.dtype(compute_dtype)
    target = int(vmem_target_bytes) if vmem_target_bytes else _default_vmem_target()
    n_pad = _round_up(out_features, _LANE)
    _, _, k_pad = _plan_k(in_features, n_pad, cdtype.itemsize, target)
    scale = 1.0 / math.sqrt(in_features)
    wt = (weight.astype(jnp.float32) * scale).T                       # (K, N), scale folded
    wt = jnp.pad(wt, ((0, k_pad - in_features),
                      (0, n_pad - out_features))).astype(cdtype)
    b = (jnp.zeros((out_features,), jnp.float32) if bias is None
         else bias.astype(jnp.float32))
    b = jnp.pad(b, (0, n_pad - out_features)).reshape(1, n_pad)       # bias stays f32
    return wt, b, out_features


def linear_act_apply(x, wt, b, out_features, *, act_name="lrelu",
                     keep_padded=False, vmem_target_bytes=None):
    """Apply prepared LinearAct params to x of shape (..., in_features).

    keep_padded=True returns the lane-padded (..., n_pad) slab so the next layer
    can consume padded features directly (skips the XLA slice/pad round trip)."""
    lead_shape = x.shape[:-1]
    in_features = x.shape[-1]
    k_pad_w, n_pad = wt.shape
    cdtype = wt.dtype
    out_dtype = x.dtype
    target = int(vmem_target_bytes) if vmem_target_bytes else _default_vmem_target()

    resident, tk, k_pad = _plan_k(in_features, n_pad, jnp.dtype(cdtype).itemsize, target)
    assert k_pad == k_pad_w, "weight was prepared with different settings"

    x2 = x.reshape(-1, in_features).astype(cdtype)
    M = x2.shape[0]
    x_item = jnp.dtype(cdtype).itemsize
    out_item = jnp.dtype(out_dtype).itemsize
    floor = max(_SUBLANE, 32 // x_item)        # bf16/fp8 pack 2/4 rows per sublane

    if resident:
        fixed = k_pad * n_pad * x_item + 2 * n_pad * 4         # 1-buf weight + bias
        per_row = 2 * k_pad * x_item + 2 * n_pad * out_item
    else:
        acc_bytes = 0 if out_dtype == jnp.float32 else n_pad * 4
        fixed = 2 * tk * n_pad * x_item + 2 * n_pad * 4        # 2-buf weight tiles + bias
        per_row = 2 * tk * x_item + 2 * n_pad * out_item + acc_bytes
    tm = _choose_tm(M, per_row, max(target - fixed, 4 << 20), floor)

    m_pad = _round_up(max(M, 1), tm)
    num_m = m_pad // tm
    if m_pad != M or k_pad != in_features:
        x2 = jnp.pad(x2, ((0, m_pad - M), (0, k_pad - in_features)))

    cost = pl.CostEstimate(
        flops=int(2 * m_pad * k_pad * n_pad),
        transcendentals=0,
        bytes_accessed=int(x2.size * x_item + wt.size * x_item
                           + b.size * 4 + m_pad * n_pad * out_item),
    )
    vmem_limit = int(max(target, 16 << 20))

    if resident:
        kernel = functools.partial(_linear_act_kernel, act_name=act_name)

        def _call(single_buffer_weight):
            mode = {"pipeline_mode": pl.Buffered(1)} if single_buffer_weight else {}
            limit = vmem_limit if single_buffer_weight else int(
                min(vmem_limit + 2 * k_pad * n_pad * x_item, 112 << 20))
            return pl.pallas_call(
                kernel,
                out_shape=jax.ShapeDtypeStruct((m_pad, n_pad), out_dtype),
                grid_spec=pltpu.PrefetchScalarGridSpec(
                    num_scalar_prefetch=0,
                    grid=(num_m,),
                    in_specs=[
                        pl.BlockSpec((tm, k_pad), lambda i: (i, 0)),
                        pl.BlockSpec((k_pad, n_pad), lambda i: (0, 0), **mode),  # resident W
                        pl.BlockSpec((1, n_pad), lambda i: (0, 0), **mode),      # resident b
                    ],
                    out_specs=pl.BlockSpec((tm, n_pad), lambda i: (i, 0)),
                ),
                compiler_params=pltpu.CompilerParams(
                    dimension_semantics=("parallel",),
                    vmem_limit_bytes=limit,
                ),
                cost_estimate=cost,
            )(x2, wt, b)

        try:
            out = _call(True)        # invariant weight/bias single-buffered
        except Exception:
            out = _call(False)       # jax without pipeline_mode / Buffered(1): double-buffer
    else:
        num_k = k_pad // tk
        if out_dtype == jnp.float32:
            kernel = functools.partial(_ktiled_kernel_f32out, act_name=act_name)
            scratch = []
        else:
            kernel = functools.partial(_ktiled_kernel, act_name=act_name)
            scratch = [pltpu.VMEM((tm, n_pad), jnp.float32)]
        out = pl.pallas_call(
            kernel,
            out_shape=jax.ShapeDtypeStruct((m_pad, n_pad), out_dtype),
            grid_spec=pltpu.PrefetchScalarGridSpec(
                num_scalar_prefetch=0,
                grid=(num_m, num_k),                           # reduction axis last
                in_specs=[
                    pl.BlockSpec((tm, tk), lambda i, k: (i, k)),
                    pl.BlockSpec((tk, n_pad), lambda i, k: (k, 0)),
                    pl.BlockSpec((1, n_pad), lambda i, k: (0, 0)),
                ],
                out_specs=pl.BlockSpec((tm, n_pad), lambda i, k: (i, 0)),
                scratch_shapes=scratch,
            ),
            compiler_params=pltpu.CompilerParams(
                dimension_semantics=("parallel", "arbitrary"),
                vmem_limit_bytes=vmem_limit,
            ),
            cost_estimate=cost,
        )(x2, wt, b)

    out = out[:M] if m_pad != M else out
    if keep_padded:
        return out.reshape(*lead_shape, n_pad)
    return out[:, :out_features].reshape(*lead_shape, out_features)


def linear_act(x, weight, bias, *, act_name="lrelu", compute_dtype=jnp.bfloat16,
               keep_padded=False, vmem_target_bytes=None):
    """Convenience path: prepare params and apply in one call."""
    wt, b, n = prepare_linear_act_params(weight, bias, compute_dtype=compute_dtype,
                                         vmem_target_bytes=vmem_target_bytes)
    return linear_act_apply(x, wt, b, n, act_name=act_name, keep_padded=keep_padded,
                            vmem_target_bytes=vmem_target_bytes)


# ---------------- fused multi-layer affine (Synthesis style affines) ----------------

def prepare_fused_affine_params(weights, biases, *, compute_dtype=jnp.bfloat16):
    """Stack many per-layer style affines (all sharing in_features = style_dim)
    into one padded, scale-folded parameter set for a single pallas_call.
    Returns (wt_stack (L,K,Npad), bias_stack (L,1,Npad) f32, tuple of true Ns)."""
    cdtype = jnp.dtype(compute_dtype)
    k = weights[0].shape[1]
    n_pad = _round_up(max(w.shape[0] for w in weights), _LANE)
    scale = 1.0 / math.sqrt(k)
    wts, bs, ns = [], [], []
    for w, b in zip(weights, biases):
        n, k_w = w.shape
        assert k_w == k, "fused affines must share in_features (style_dim)"
        wt = jnp.pad((w.astype(jnp.float32) * scale).T, ((0, 0), (0, n_pad - n)))
        wts.append(wt.astype(cdtype))
        bb = jnp.zeros((n,), jnp.float32) if b is None else b.astype(jnp.float32)
        bs.append(jnp.pad(bb, (0, n_pad - n)))
        ns.append(n)
    return jnp.stack(wts), jnp.stack(bs)[:, None, :], tuple(ns)


def fused_affine_apply(styles, wt_stack, b_stack, *, act_name="linear"):
    """One pallas_call for all L style-affine layers (amortizes launch, pad/slice
    and per-grid-step fixed overhead that dominates the tiny Synthesis affines).
    styles: (L, B, style_dim); returns the lane-padded (L, B, n_pad) slab."""
    L, B, K = styles.shape
    n_pad = wt_stack.shape[-1]
    cdtype = wt_stack.dtype
    out_dtype = styles.dtype
    floor = max(_SUBLANE, 32 // jnp.dtype(cdtype).itemsize)
    b_pad = _round_up(B, floor)
    x = styles.astype(cdtype)
    if b_pad != B:
        x = jnp.pad(x, ((0, 0), (0, b_pad - B), (0, 0)))
    out = pl.pallas_call(
        functools.partial(_linear_act_kernel, act_name=act_name),
        out_shape=jax.ShapeDtypeStruct((L, b_pad, n_pad), out_dtype),
        grid_spec=pltpu.PrefetchScalarGridSpec(
            num_scalar_prefetch=0,
            grid=(L,),
            in_specs=[
                pl.BlockSpec((None, b_pad, K), lambda l: (l, 0, 0)),
                pl.BlockSpec((None, K, n_pad), lambda l: (l, 0, 0)),
                pl.BlockSpec((None, 1, n_pad), lambda l: (l, 0, 0)),
            ],
            out_specs=pl.BlockSpec((None, b_pad, n_pad), lambda l: (l, 0, 0)),
        ),
        compiler_params=pltpu.CompilerParams(
            dimension_semantics=("parallel",),    # layers independent -> megacore split
            vmem_limit_bytes=int(max(_default_vmem_target(), 16 << 20)),
        ),
    )(x, wt_stack, b_stack)
    return out[:, :B, :]


# ---------------- reference & tests ----------------

def _reference(x, weight, bias, act_name, quant_dtype=None):
    scale = 1.0 / math.sqrt(weight.shape[1])
    ws = weight.astype(jnp.float32) * scale
    xs = x.astype(jnp.float32)
    if quant_dtype is not None:
        ws = ws.astype(quant_dtype).astype(jnp.float32)
        xs = xs.astype(quant_dtype).astype(jnp.float32)
    y = jnp.matmul(xs, ws.T, precision=jax.lax.Precision.HIGHEST)
    if bias is not None:
        y = y + bias.astype(jnp.float32)
    if act_name == "lrelu":
        y = jnp.where(y >= 0.0, y, LRELU_ALPHA * y) * LRELU_GAIN
    return y


if __name__ == "__main__":
    key = jax.random.PRNGKey(0)
    ks = jax.random.split(key, 8)

    # --- test 1: mapping-style lrelu layer, default bf16 compute (f32 accumulation) ---
    batch, in_f, out_f = 8, 32, 64
    x = jax.random.normal(ks[0], (batch, in_f), jnp.float32)
    w = jax.random.normal(ks[1], (out_f, in_f), jnp.float32)
    b = jnp.zeros((out_f,), jnp.float32)
    wt, bp, n_true = prepare_linear_act_params(w, b)
    y = linear_act_apply(x, wt, bp, n_true, act_name="lrelu")
    jax.block_until_ready(y)
    ref = _reference(x, w, b, "lrelu", quant_dtype=jnp.bfloat16)
    assert y.shape == ref.shape
    assert jnp.allclose(y, ref, atol=2e-3, rtol=2e-3), "lrelu bf16 path mismatch"

    # --- test 2: exact f32 compute path (resident weight) ---
    yf = linear_act(x, w, b, act_name="lrelu", compute_dtype=jnp.float32)
    jax.block_until_ready(yf)
    reff = _reference(x, w, b, "lrelu")
    assert jnp.allclose(yf, reff, atol=1e-5, rtol=1e-5), "lrelu f32 path mismatch"

    # --- test 3: 3-D styles through the affine ('linear') path (bias init'd to 1.0) ---
    x3 = jax.random.normal(ks[2], (2, 3, 32), jnp.float32)
    w2 = jax.random.normal(ks[3], (16, 32), jnp.float32)
    b2 = jnp.ones((16,), jnp.float32)
    y2 = linear_act(x3, w2, b2, act_name="linear")
    jax.block_until_ready(y2)
    ref2 = _reference(x3, w2, b2, "linear", quant_dtype=jnp.bfloat16)
    assert jnp.allclose(y2, ref2, atol=2e-3, rtol=2e-3), "affine ('linear') path mismatch"

    # --- test 4: forced K-tiled path (tiny VMEM target), f32 accumulate-into-output ---
    xk = jax.random.normal(ks[4], (8, 2304), jnp.float32)
    wk = jax.random.normal(ks[5], (48, 2304), jnp.float32) * 0.1
    bk = jnp.zeros((48,), jnp.float32)
    yk = linear_act(xk, wk, bk, act_name="lrelu", compute_dtype=jnp.float32,
                    vmem_target_bytes=1 << 20)
    jax.block_until_ready(yk)
    refk = _reference(xk, wk, bk, "lrelu")
    assert jnp.allclose(yk, refk, atol=1e-3, rtol=1e-3), "K-tiled f32 path mismatch"

    # --- test 5: forced K-tiled path, bf16 in/out (f32 scratch accumulator) ---
    yk16 = linear_act(xk.astype(jnp.bfloat16), wk, bk, act_name="lrelu",
                      compute_dtype=jnp.bfloat16, vmem_target_bytes=512 << 10)
    jax.block_until_ready(yk16)
    refk16 = _reference(xk.astype(jnp.bfloat16), wk, bk, "lrelu",
                        quant_dtype=jnp.bfloat16)
    assert jnp.allclose(yk16.astype(jnp.float32), refk16, atol=2e-2, rtol=2e-2), \
        "K-tiled bf16 path mismatch"

    # --- test 6: fused multi-layer style affines in one pallas_call ---
    style_dim, B, L = 32, 2, 3
    n_list = (16, 48, 64)
    wkeys = jax.random.split(ks[6], L)
    aff_w = [jax.random.normal(wkeys[i], (n_list[i], style_dim), jnp.float32)
             for i in range(L)]
    aff_b = [jnp.ones((n_list[i],), jnp.float32) for i in range(L)]
    styles = jax.random.normal(ks[7], (L, B, style_dim), jnp.float32)
    wst, bst, ns = prepare_fused_affine_params(aff_w, aff_b)
    fused = fused_affine_apply(styles, wst, bst, act_name="linear")
    jax.block_until_ready(fused)
    for i in range(L):
        refi = _reference(styles[i], aff_w[i], aff_b[i], "linear",
                          quant_dtype=jnp.bfloat16)
        assert jnp.allclose(fused[i, :, :ns[i]], refi, atol=2e-3, rtol=2e-3), \
            f"fused affine layer {i} mismatch"

    print("KERNEL_OK")
</pallas_src>

<mosaic_0001>
module attributes {stable_mosaic.version = 11 : i64} {
  func.func @_linear_act_kernel(%arg0: i32, %arg1: memref<16x32xbf16, #tpu.memory_space<vmem>>, %arg2: memref<32x128xbf16, #tpu.memory_space<vmem>>, %arg3: memref<1x128xf32, #tpu.memory_space<vmem>>, %arg4: memref<16x128xf32, #tpu.memory_space<vmem>>) attributes {dimension_semantics = [#tpu.dimension_semantics<parallel>], iteration_bounds = array<i64: 1>, scalar_prefetch = 0 : i64, scratch_operands = 0 : i64, tpu.core_type = #tpu.core_type<tc>, window_params = [{transform_indices = @transform_0, window_bounds = array<i64: 16, 32>}, {pipeline_mode = #tpu.pipeline_mode<synchronous>, transform_indices = @transform_1, window_bounds = array<i64: 32, 128>}, {pipeline_mode = #tpu.pipeline_mode<synchronous>, transform_indices = @transform_2, window_bounds = array<i64: 1, 128>}, {transform_indices = @transform_3, window_bounds = array<i64: 16, 128>}]} {
    %c0 = arith.constant 0 : index
    %c0_0 = arith.constant 0 : index
    %0 = vector.load %arg1[%c0, %c0_0] : memref<16x32xbf16, #tpu.memory_space<vmem>>, vector<16x32xbf16>
    %c0_1 = arith.constant 0 : index
    %c0_2 = arith.constant 0 : index
    %1 = vector.load %arg2[%c0_1, %c0_2] : memref<32x128xbf16, #tpu.memory_space<vmem>>, vector<32x128xbf16>
    %cst = arith.constant dense<0.000000e+00> : vector<16x128xf32>
    %2 = tpu.matmul %0, %1, %cst {dimension_numbers = #tpu.dot_dimension_numbers<[1], [0], [0], [1], [0, 0, 1, 1], [], []>} : vector<16x32xbf16>, vector<32x128xbf16>, vector<16x128xf32> -> vector<16x128xf32>
    %c0_3 = arith.constant 0 : index
    %c0_4 = arith.constant 0 : index
    %3 = vector.load %arg3[%c0_3, %c0_4] : memref<1x128xf32, #tpu.memory_space<vmem>>, vector<1x128xf32>
    %4 = vector.broadcast %3 : vector<1x128xf32> to vector<16x128xf32>
    %5 = arith.addf %2, %4 : vector<16x128xf32>
    %cst_5 = arith.constant 0.000000e+00 : f32
    %6 = vector.broadcast %cst_5 : f32 to vector<16x128xf32>
    %7 = arith.cmpf oge, %5, %6 : vector<16x128xf32>
    %cst_6 = arith.constant 1.41421354 : f32
    %cst_7 = arith.constant 0.282842726 : f32
    %8 = vector.broadcast %cst_6 : f32 to vector<16x128xf32>
    %9 = vector.broadcast %cst_7 : f32 to vector<16x128xf32>
    %10 = arith.select %7, %8, %9 : vector<16x128xi1>, vector<16x128xf32>
    %11 = arith.mulf %5, %10 : vector<16x128xf32>
    %c0_8 = arith.constant 0 : index
    %c0_9 = arith.constant 0 : index
    %12 = vector.load %arg4[%c0_8, %c0_9] : memref<16x128xf32, #tpu.memory_space<vmem>>, vector<16x128xf32>
    tpu.vector_store %arg4[%c0_8, %c0_9], %11 {strides = array<i32>} : memref<16x128xf32, #tpu.memory_space<vmem>>, vector<16x128xf32>,
    return
  }
  func.func @transform_0(%arg0: i32) -> (i32, i32) {
    %c0_i32 = arith.constant 0 : i32
    %c0_i32_0 = arith.constant 0 : i32
    return %arg0, %c0_i32 : i32, i32
  }
  func.func @transform_1(%arg0: i32) -> (i32, i32) {
    %c0_i32 = arith.constant 0 : i32
    %c0_i32_0 = arith.constant 0 : i32
    %c0_i32_1 = arith.constant 0 : i32
    return %c0_i32, %c0_i32_0 : i32, i32
  }
  func.func @transform_2(%arg0: i32) -> (i32, i32) {
    %c0_i32 = arith.constant 0 : i32
    %c0_i32_0 = arith.constant 0 : i32
    %c0_i32_1 = arith.constant 0 : i32
    return %c0_i32, %c0_i32_0 : i32, i32
  }
  func.func @transform_3(%arg0: i32) -> (i32, i32) {
    %c0_i32 = arith.constant 0 : i32
    %c0_i32_0 = arith.constant 0 : i32
    return %arg0, %c0_i32 : i32, i32
  }
}

module attributes {stable_mosaic.version = 11 : i64} {
  func.func @_linear_act_kernel(%arg0: i32, %arg1: memref<16x32xbf16, #tpu.memory_space<vmem>>, %arg2: memref<32x128xbf16, #tpu.memory_space<vmem>>, %arg3: memref<1x128xf32, #tpu.memory_space<vmem>>, %arg4: memref<16x128xf32, #tpu.memory_space<vmem>>) attributes {dimension_semantics = [#tpu.dimension_semantics<parallel>], iteration_bounds = array<i64: 1>, scalar_prefetch = 0 : i64, scratch_operands = 0 : i64, tpu.core_type = #tpu.core_type<tc>, window_params = [{transform_indices = @transform_0, window_bounds = array<i64: 16, 32>}, {pipeline_mode = #tpu.pipeline_mode<synchronous>, transform_indices = @transform_1, window_bounds = array<i64: 32, 128>}, {pipeline_mode = #tpu.pipeline_mode<synchronous>, transform_indices = @transform_2, window_bounds = array<i64: 1, 128>}, {transform_indices = @transform_3, window_bounds = array<i64: 16, 128>}]} {
    %c0 = arith.constant 0 : index
    %c0_0 = arith.constant 0 : index
    %0 = vector.load %arg1[%c0, %c0_0] : memref<16x32xbf16, #tpu.memory_space<vmem>>, vector<16x32xbf16>
    %c0_1 = arith.constant 0 : index
    %c0_2 = arith.constant 0 : index
    %1 = vector.load %arg2[%c0_1, %c0_2] : memref<32x128xbf16, #tpu.memory_space<vmem>>, vector<32x128xbf16>
    %cst = arith.constant dense<0.000000e+00> : vector<16x128xf32>
    %2 = tpu.matmul %0, %1, %cst {dimension_numbers = #tpu.dot_dimension_numbers<[1], [0], [0], [1], [0, 0, 1, 1], [], []>} : vector<16x32xbf16>, vector<32x128xbf16>, vector<16x128xf32> -> vector<16x128xf32>
    %c0_3 = arith.constant 0 : index
    %c0_4 = arith.constant 0 : index
    %3 = vector.load %arg3[%c0_3, %c0_4] : memref<1x128xf32, #tpu.memory_space<vmem>>, vector<1x128xf32>
    %4 = vector.broadcast %3 : vector<1x128xf32> to vector<16x128xf32>
    %5 = arith.addf %2, %4 : vector<16x128xf32>
    %cst_5 = arith.constant 0.000000e+00 : f32
    %6 = vector.broadcast %cst_5 : f32 to vector<16x128xf32>
    %7 = arith.cmpf oge, %5, %6 : vector<16x128xf32>
    %cst_6 = arith.constant 1.41421354 : f32
    %cst_7 = arith.constant 0.282842726 : f32
    %8 = vector.broadcast %cst_6 : f32 to vector<16x128xf32>
    %9 = vector.broadcast %cst_7 : f32 to vector<16x128xf32>
    %10 = arith.select %7, %8, %9 : vector<16x128xi1>, vector<16x128xf32>
    %11 = arith.mulf %5, %10 : vector<16x128xf32>
    %c0_8 = arith.constant 0 : index
    %c0_9 = arith.constant 0 : index
    %12 = vector.load %arg4[%c0_8, %c0_9] : memref<16x128xf32, #tpu.memory_space<vmem>>, vector<16x128xf32>
    tpu.vector_store %arg4[%c0_8, %c0_9], %11 {strides = array<i32>} : memref<16x128xf32, #tpu.memory_space<vmem>>, vector<16x128xf32>,
    return
  }
  func.func @transform_0(%arg0: i32) -> (i32, i32) {
    %c0_i32 = arith.constant 0 : i32
    %c0_i32_0 = arith.constant 0 : i32
    return %arg0, %c0_i32 : i32, i32
  }
  func.func @transform_1(%arg0: i32) -> (i32, i32) {
    %c0_i32 = arith.constant 0 : i32
    %c0_i32_0 = arith.constant 0 : i32
    %c0_i32_1 = arith.constant 0 : i32
    return %c0_i32, %c0_i32_0 : i32, i32
  }
  func.func @transform_2(%arg0: i32) -> (i32, i32) {
    %c0_i32 = arith.constant 0 : i32
    %c0_i32_0 = arith.constant 0 : i32
    %c0_i32_1 = arith.constant 0 : i32
    return %c0_i32, %c0_i32_0 : i32, i32
  }
  func.func @transform_3(%arg0: i32) -> (i32, i32) {
    %c0_i32 = arith.constant 0 : i32
    %c0_i32_0 = arith.constant 0 : i32
    return %arg0, %c0_i32 : i32, i32
  }
}

</mosaic_0001>

<bundles_post_ra>
// kernel: tpu_custom_call.1
= control target key start
LH: loop header
LB: loop body
LE: loop exit
PB: predicated region body
PF: predicated region fallthrough
CT: control target
= control target key end

     0   :  { %8 = vsyncpa [#allocation3], 0  ;;  %s315_s0 = inlined_call_operand.hbm [shape: bf16[16,32], index: 0, kind: input, shape index: {}]   ;;  %s316_s1 = inlined_call_operand.hbm [shape: bf16[32,128], index: 1, kind: input, shape index: {}]   ;;  %s317_s2 = inlined_call_operand.vmem [shape: f32[1,128], index: 2, kind: input, shape index: {}]   ;;  %s318_s3 = inlined_call_operand.hbm [shape: f32[16,128], index: 3, kind: output, shape index: {}]  }
   0x1   :  { %9 = vsyncpa [#allocation6], 0 }
   0x2   :  { %10 = vsyncpa [#allocation4], 0  ;;  %s246_s12 = smov [#allocation2]   ;;  %s174_s16 = scalar_lea.hbm %s315_s0, 128 }
   0x3   :  { %s16_s13 = sshll.u32 %s246_s12, 4  ;;  %p175_p0 = scmp.ne.s32.totalorder %s315_s0, %s174_s16  ;;  %s17_s13 = int_to_ptr.vmem [resolvable:$true] %s16_s13 }
   0x4   :  { %p178_p1 = scmp.lt.u32.totalorder %s174_s16, %s315_s0 }
   0x6   :  { %p180_p2 = pnand %p178_p1, %p175_p0 }
   0x8   :  { %183 = shalt.err (!%p180_p2)
}
   0x9   :  { %s184_s21 = scalar_lea.vmem %s17_s13, 128  ;;  %p189_p4 = scmp.lt.s32.totalorder %s17_s13, %s17_s13 }
   0xa   :  { %p185_p3 = scmp.ne.s32.totalorder %s17_s13, %s184_s21  ;;  %p190_p5 = scmp.lt.s32.totalorder %s184_s21, %s184_s21 }
   0xc   :  { %p191_p6 = por %p190_p5, %p189_p4 }
   0xe   :  { %p192_p7 = pnand %p191_p6, %p185_p3 }
  0x10   :  { %195 = shalt.err (!%p192_p7)
}
  0x11   :  { %s247_s22 = smov 64   ;;  %s248_s23 = smov 4  }
  0x12   :  { %22 = dma.hbm_to_vmem [thread:$0]  %s315_s0, 128, %s17_s13, [#allocation3], %s247_s22, %s247_s22, %s248_s23  }
  0x13   :  { %s249_s26 = smov [#allocation5]   ;;  %s196_s30 = scalar_lea.hbm %s316_s1, 256 }
  0x14   :  { %s28_s27 = sshll.u32 %s249_s26, 4  ;;  %p197_p8 = scmp.ne.s32.totalorder %s316_s1, %s196_s30  ;;  %s29_s27 = int_to_ptr.vmem [resolvable:$true] %s28_s27 }
  0x15   :  { %p200_p9 = scmp.lt.u32.totalorder %s196_s30, %s316_s1 }
  0x17   :  { %p202_p10 = pnand %p200_p9, %p197_p8 }
  0x19   :  { %205 = shalt.err (!%p202_p10)
}
  0x1a   :  { %s206_s8 = scalar_lea.vmem %s29_s27, 256  ;;  %p211_p12 = scmp.lt.s32.totalorder %s29_s27, %s29_s27 }
  0x1b   :  { %p207_p11 = scmp.ne.s32.totalorder %s29_s27, %s206_s8  ;;  %p212_p13 = scmp.lt.s32.totalorder %s206_s8, %s206_s8 }
  0x1d   :  { %p213_p0 = por %p212_p13, %p211_p12 }
  0x1f   :  { %p214_p1 = pnand %p213_p0, %p207_p11 }
  0x21   :  { %217 = shalt.err (!%p214_p1)
}
  0x22   :  { %34 = dma.hbm_to_vmem [thread:$0]  %s316_s1, 256, %s29_s27, [#allocation6], %s247_s22, %s247_s22, %s248_s23  }
  0x23   :  { %240 = dma.done.wait [#allocation3], 128  }
  0x24   :  { %241 = vsyncadd [#allocation3], 4294967168 }
  0x25   :  { %242 = dma.done.wait [#allocation6], 256  }
  0x26   :  { %243 = vsyncadd [#allocation6], 4294967040  ;;  %v250_v0 = vmov 0.0   ;;  %vm251_vm0 = vmmov 0   ;;  %v171_v1 = vld [vmem:[#allocation5] sm:$0xff]   ;;  %v172_v2 = vld [vmem:[#allocation5 + $0x8] sm:$0xff]  }
  0x27   :  { %153 = vmatprep.subr.bf16.mxu0 %v250_v0  ;;  %157 = vmatprep.mubr.msk.bf16.mxu0 %vm251_vm0, %v250_v0  ;;  %v173_v3 = vld [vmem:[#allocation2] sm:$0xff]   ;;  %vm74_vm1 = vcmask 261120   ;;  %s252_s1 = smov [#allocation7]   ;;  %v253_v11 = vmov 0.28284273  }
  0x28   :  { %154 = vmatpush3.bf16.msra.mxu0 %v171_v1  ;;  %v145_v4 = vld [vmem:[%s317_s2] ss:$0 sm:$0xff]  ;;  %s132_s12 = sshll.u32 %s252_s1, 4  ;;  %s133_s12 = int_to_ptr.vmem [resolvable:$true] %s132_s12 }
  0x29   :  { %155 = vmatprep.subr.bf16.mxu0 %v250_v0  ;;  %s218_s13 = scalar_lea.vmem %s133_s12, 256  ;;  %p223_p3 = scmp.lt.s32.totalorder %s133_s12, %s133_s12 }
  0x2a   :  { %p219_p2 = scmp.ne.s32.totalorder %s133_s12, %s218_s13  ;;  %p224_p4 = scmp.lt.s32.totalorder %s218_s13, %s218_s13 }
  0x2c   :  { %156 = vmatpush3.bf16.msra.mxu0 %v172_v2  ;;  %p225_p5 = por %p224_p4, %p223_p3 }
  0x2e   :  { %p226_p6 = pnand %p225_p5, %p219_p2 }
  0x2f   :  { %158 = vmatmul.mubr.msk.bf16.vlgmr.msra.gmra.mrb[0].mxu0 %vm74_vm1, %v173_v3 }
 0x102   :  { %v112_v5 = vpop.f32.mrb[0].mxu0 }
 0x103   :  { %v113_v6 = vadd.f32 %v145_v4, %v112_v5  ;;  %v159_v7 = vpop.f32.mrb[1].mxu0 }
 0x104   :  { %v115_v8 = vpop.f32.mrb[2].mxu0 }
 0x105   :  { %vm119_vm2 = vcmp.ge.f32.partialorder %v113_v6, 0.0  ;;  %v116_v9 = vadd.f32 %v145_v4, %v115_v8  ;;  %v160_v10 = vpop.f32.mrb[3].mxu0 }
 0x106   :  { %v121_v12 = vsel %vm119_vm2, 1.4142135, %v253_v11 }
 0x107   :  { %v123_v13 = vmul.f32 %v121_v12, %v113_v6  ;;  %vm120_vm3 = vcmp.ge.f32.partialorder %v116_v9, 0.0 }
 0x108   :  { %v122_v14 = vsel %vm120_vm3, 1.4142135, %v253_v11 }
 0x109   :  { %125 = vst [vmem:[#allocation7] sm:$0xff] %v123_v13  ;;  %v124_v15 = vmul.f32 %v122_v14, %v116_v9 }
 0x10b   :  { %126 = vst [vmem:[#allocation7 + $0x8] sm:$0xff] %v124_v15 }
 0x10c   :  { %229 = shalt.err (!%p226_p6)
}
 0x10d   :  { %s230_s15 = scalar_lea.hbm %s318_s3, 256 }
 0x10e   :  { %p231_p7 = scmp.ne.s32.totalorder %s318_s3, %s230_s15  ;;  %p234_p8 = scmp.lt.u32.totalorder %s230_s15, %s318_s3 }
 0x110   :  { %p236_p9 = pnand %p234_p8, %p231_p7 }
 0x112   :  { %239 = shalt.err (!%p236_p9)
}
 0x113   :  { %s254_s20 = smov 128   ;;  %s255_s21 = smov 8  }
 0x114   :  { %138 = dma.vmem_to_hbm [thread:$0]  %s133_s12, 256, %s318_s3, [#allocation4], %s254_s20, %s254_s20, %s255_s21  }
 0x115   :  { %244 = dma.done.wait [#allocation4], 256  }
 0x116   :  { %245 = vsyncadd [#allocation4], 4294967040 }
 0x117   :  { %142 = vsyncpa [#allocation3], 1 }
 0x118   :  { %143 = vsyncpa [#allocation6], 1 }
 0x119   :  { %144 = vsyncpa [#allocation4], 1 }

// kernel: tpu_custom_call.1
= control target key start
LH: loop header
LB: loop body
LE: loop exit
PB: predicated region body
PF: predicated region fallthrough
CT: control target
= control target key end

     0   :  { %8 = vsyncpa [#allocation3], 0  ;;  %s315_s0 = inlined_call_operand.hbm [shape: bf16[16,32], index: 0, kind: input, shape index: {}]   ;;  %s316_s1 = inlined_call_operand.hbm [shape: bf16[32,128], index: 1, kind: input, shape index: {}]   ;;  %s317_s2 = inlined_call_operand.vmem [shape: f32[1,128], index: 2, kind: input, shape index: {}]   ;;  %s318_s3 = inlined_call_operand.hbm [shape: f32[16,128], index: 3, kind: output, shape index: {}]  }
   0x1   :  { %9 = vsyncpa [#allocation6], 0 }
   0x2   :  { %10 = vsyncpa [#allocation4], 0  ;;  %s246_s12 = smov [#allocation2]   ;;  %s174_s16 = scalar_lea.hbm %s315_s0, 128 }
   0x3   :  { %s16_s13 = sshll.u32 %s246_s12, 4  ;;  %p175_p0 = scmp.ne.s32.totalorder %s315_s0, %s174_s16  ;;  %s17_s13 = int_to_ptr.vmem [resolvable:$true] %s16_s13 }
   0x4   :  { %p178_p1 = scmp.lt.u32.totalorder %s174_s16, %s315_s0 }
   0x6   :  { %p180_p2 = pnand %p178_p1, %p175_p0 }
   0x8   :  { %183 = shalt.err (!%p180_p2)
}
   0x9   :  { %s184_s21 = scalar_lea.vmem %s17_s13, 128  ;;  %p189_p4 = scmp.lt.s32.totalorder %s17_s13, %s17_s13 }
   0xa   :  { %p185_p3 = scmp.ne.s32.totalorder %s17_s13, %s184_s21  ;;  %p190_p5 = scmp.lt.s32.totalorder %s184_s21, %s184_s21 }
   0xc   :  { %p191_p6 = por %p190_p5, %p189_p4 }
   0xe   :  { %p192_p7 = pnand %p191_p6, %p185_p3 }
  0x10   :  { %195 = shalt.err (!%p192_p7)
}
  0x11   :  { %s247_s22 = smov 64   ;;  %s248_s23 = smov 4  }
  0x12   :  { %22 = dma.hbm_to_vmem [thread:$0]  %s315_s0, 128, %s17_s13, [#allocation3], %s247_s22, %s247_s22, %s248_s23  }
  0x13   :  { %s249_s26 = smov [#allocation5]   ;;  %s196_s30 = scalar_lea.hbm %s316_s1, 256 }
  0x14   :  { %s28_s27 = sshll.u32 %s249_s26, 4  ;;  %p197_p8 = scmp.ne.s32.totalorder %s316_s1, %s196_s30  ;;  %s29_s27 = int_to_ptr.vmem [resolvable:$true] %s28_s27 }
  0x15   :  { %p200_p9 = scmp.lt.u32.totalorder %s196_s30, %s316_s1 }
  0x17   :  { %p202_p10 = pnand %p200_p9, %p197_p8 }
  0x19   :  { %205 = shalt.err (!%p202_p10)
}
  0x1a   :  { %s206_s8 = scalar_lea.vmem %s29_s27, 256  ;;  %p211_p12 = scmp.lt.s32.totalorder %s29_s27, %s29_s27 }
  0x1b   :  { %p207_p11 = scmp.ne.s32.totalorder %s29_s27, %s206_s8  ;;  %p212_p13 = scmp.lt.s32.totalorder %s206_s8, %s206_s8 }
  0x1d   :  { %p213_p0 = por %p212_p13, %p211_p12 }
  0x1f   :  { %p214_p1 = pnand %p213_p0, %p207_p11 }
  0x21   :  { %217 = shalt.err (!%p214_p1)
}
  0x22   :  { %34 = dma.hbm_to_vmem [thread:$0]  %s316_s1, 256, %s29_s27, [#allocation6], %s247_s22, %s247_s22, %s248_s23  }
  0x23   :  { %240 = dma.done.wait [#allocation3], 128  }
  0x24   :  { %241 = vsyncadd [#allocation3], 4294967168 }
  0x25   :  { %242 = dma.done.wait [#allocation6], 256  }
  0x26   :  { %243 = vsyncadd [#allocation6], 4294967040  ;;  %v250_v0 = vmov 0.0   ;;  %vm251_vm0 = vmmov 0   ;;  %v171_v1 = vld [vmem:[#allocation5] sm:$0xff]   ;;  %v172_v2 = vld [vmem:[#allocation5 + $0x8] sm:$0xff]  }
  0x27   :  { %153 = vmatprep.subr.bf16.mxu0 %v250_v0  ;;  %157 = vmatprep.mubr.msk.bf16.mxu0 %vm251_vm0, %v250_v0  ;;  %v173_v3 = vld [vmem:[#allocation2] sm:$0xff]   ;;  %vm74_vm1 = vcmask 261120   ;;  %s252_s1 = smov [#allocation7]   ;;  %v253_v11 = vmov 0.28284273  }
  0x28   :  { %154 = vmatpush3.bf16.msra.mxu0 %v171_v1  ;;  %v145_v4 = vld [vmem:[%s317_s2] ss:$0 sm:$0xff]  ;;  %s132_s12 = sshll.u32 %s252_s1, 4  ;;  %s133_s12 = int_to_ptr.vmem [resolvable:$true] %s132_s12 }
  0x29   :  { %155 = vmatprep.subr.bf16.mxu0 %v250_v0  ;;  %s218_s13 = scalar_lea.vmem %s133_s12, 256  ;;  %p223_p3 = scmp.lt.s32.totalorder %s133_s12, %s133_s12 }
  0x2a   :  { %p219_p2 = scmp.ne.s32.totalorder %s133_s12, %s218_s13  ;;  %p224_p4 = scmp.lt.s32.totalorder %s218_s13, %s218_s13 }
  0x2c   :  { %156 = vmatpush3.bf16.msra.mxu0 %v172_v2  ;;  %p225_p5 = por %p224_p4, %p223_p3 }
  0x2e   :  { %p226_p6 = pnand %p225_p5, %p219_p2 }
  0x2f   :  { %158 = vmatmul.mubr.msk.bf16.vlgmr.msra.gmra.mrb[0].mxu0 %vm74_vm1, %v173_v3 }
 0x102   :  { %v112_v5 = vpop.f32.mrb[0].mxu0 }
 0x103   :  { %v113_v6 = vadd.f32 %v145_v4, %v112_v5  ;;  %v159_v7 = vpop.f32.mrb[1].mxu0 }
 0x104   :  { %v115_v8 = vpop.f32.mrb[2].mxu0 }
 0x105   :  { %vm119_vm2 = vcmp.ge.f32.partialorder %v113_v6, 0.0  ;;  %v116_v9 = vadd.f32 %v145_v4, %v115_v8  ;;  %v160_v10 = vpop.f32.mrb[3].mxu0 }
 0x106   :  { %v121_v12 = vsel %vm119_vm2, 1.4142135, %v253_v11 }
 0x107   :  { %v123_v13 = vmul.f32 %v121_v12, %v113_v6  ;;  %vm120_vm3 = vcmp.ge.f32.partialorder %v116_v9, 0.0 }
 0x108   :  { %v122_v14 = vsel %vm120_vm3, 1.4142135, %v253_v11 }
 0x109   :  { %125 = vst [vmem:[#allocation7] sm:$0xff] %v123_v13  ;;  %v124_v15 = vmul.f32 %v122_v14, %v116_v9 }
 0x10b   :  { %126 = vst [vmem:[#allocation7 + $0x8] sm:$0xff] %v124_v15 }
 0x10c   :  { %229 = shalt.err (!%p226_p6)
}
 0x10d   :  { %s230_s15 = scalar_lea.hbm %s318_s3, 256 }
 0x10e   :  { %p231_p7 = scmp.ne.s32.totalorder %s318_s3, %s230_s15  ;;  %p234_p8 = scmp.lt.u32.totalorder %s230_s15, %s318_s3 }
 0x110   :  { %p236_p9 = pnand %p234_p8, %p231_p7 }
 0x112   :  { %239 = shalt.err (!%p236_p9)
}
 0x113   :  { %s254_s20 = smov 128   ;;  %s255_s21 = smov 8  }
 0x114   :  { %138 = dma.vmem_to_hbm [thread:$0]  %s133_s12, 256, %s318_s3, [#allocation4], %s254_s20, %s254_s20, %s255_s21  }
 0x115   :  { %244 = dma.done.wait [#allocation4], 256  }
 0x116   :  { %245 = vsyncadd [#allocation4], 4294967040 }
 0x117   :  { %142 = vsyncpa [#allocation3], 1 }
 0x118   :  { %143 = vsyncpa [#allocation6], 1 }
 0x119   :  { %144 = vsyncpa [#allocation4], 1 }

</bundles_post_ra>
